<compile_context>
chip_gen: v6e
topology: v6e:2x2x1
jax: 0.10.0
libtpu: 0.0.40
codegen_flags: <defaults>
</compile_context>

<pallas_src>
import functools

import jax
import jax.numpy as jnp
from jax import lax
from jax.experimental import pallas as pl
from jax.experimental.pallas import tpu as pltpu


def _round_up(x, m):
    return (x + m - 1) // m * m


# ---------------------------------------------------------------------------
# One-time parameter prep (call at init time, NOT per forward).
# ---------------------------------------------------------------------------
def prepare_s4_embedding_table(emb_weight, *, rescale=True):
    """Fold sqrt(d_model) into the weights and pad lanes to a multiple of 128."""
    n_tokens, d_model = emb_weight.shape
    w = emb_weight.astype(jnp.float32)
    if rescale:
        w = w * (float(d_model) ** 0.5)
    d_pad = _round_up(d_model, 128)
    if d_pad != d_model:
        w = jnp.pad(w, ((0, 0), (0, d_pad - d_model)))
    return w


# ---------------------------------------------------------------------------
# Path 1: small table resident in VMEM -> one-hot MXU gather.
# ---------------------------------------------------------------------------
def _onehot_gather_kernel(ids_ref, emb_ref, out_ref):
    # ids_ref : (1, rows, 1) int32   emb_ref : (V, d_pad)   out_ref : (rows, d_pad)
    ids = ids_ref[0]                                        # (rows, 1)
    n_tokens = emb_ref.shape[0]
    iota = lax.broadcasted_iota(jnp.int32, (ids.shape[0], n_tokens), 1)
    onehot = (ids == iota).astype(emb_ref.dtype)            # (rows, V)
    out_ref[...] = jnp.dot(onehot, emb_ref[...],
                           preferred_element_type=jnp.float32).astype(out_ref.dtype)


# ---------------------------------------------------------------------------
# Path 2: large table in HBM -> double-buffered per-row DMA gather.
# ---------------------------------------------------------------------------
def _dma_gather_kernel(ids_ref, emb_hbm, out_ref, gbuf, sems, *, rows, n_inner):
    # ids_ref : (n_pad,) int32 in SMEM (scalar prefetch)
    # emb_hbm : (V, d_pad) float32, resident in HBM (memory_space=pl.ANY)
    # out_ref : (rows, d_pad) VMEM output block (auto-pipelined writeback)
    # gbuf    : (2, rows, d_pad) VMEM double-buffered gather scratch
    # sems    : (2,) DMA semaphores, one per gather slot (shared by all rows)
    o = pl.program_id(0)
    i = pl.program_id(1)
    tile = o * n_inner + i
    cur = i % 2

    def issue(tile_idx, slot):
        base = tile_idx * rows
        for r in range(rows):                         # static unroll
            tok = ids_ref[base + r]                   # SMEM read (before any wait)
            pltpu.make_async_copy(
                emb_hbm.at[pl.ds(tok, 1)],            # (1, d_pad) row in HBM
                gbuf.at[slot, pl.ds(r, 1)],           # (1, d_pad) slot in VMEM
                sems.at[slot]).start()

    # Prime the first tile of this outer block (no previous step issued it).
    @pl.when(i == 0)
    def _():
        issue(tile, cur)

    # Prefetch the NEXT tile's rows before waiting on the current ones so the
    # gather latency overlaps this step's copy + the pipeline's HBM writeback.
    @pl.when(i + 1 < n_inner)
    def _():
        issue(tile + 1, 1 - cur)

    # Wait for every row of the current slot (reconstructed descriptors on the
    # shared per-slot semaphore only carry the per-row transfer size).
    for r in range(rows):
        pltpu.make_async_copy(
            emb_hbm.at[pl.ds(0, 1)],
            gbuf.at[cur, pl.ds(r, 1)],
            sems.at[cur]).wait()

    # Lane-dense store; the sqrt(d_model) rescale was folded into the table.
    out_ref[...] = gbuf[cur]


# ---------------------------------------------------------------------------
# Forward pass.
# ---------------------------------------------------------------------------
def s4_embedding_forward(x, prepared_table, d_model, *, rows_per_tile=128,
                         table_in_vmem=None, vmem_table_threshold=4 << 20):
    """x: int (B, S); prepared_table: output of prepare_s4_embedding_table."""
    b, s = x.shape
    n_tokens, d_pad = prepared_table.shape
    itemsize = prepared_table.dtype.itemsize
    assert d_pad % 128 == 0

    n = b * s
    if table_in_vmem is None:
        table_in_vmem = n_tokens * d_pad * itemsize <= vmem_table_threshold

    # f32 sublane alignment on the output block.
    # TODO(synk): a bf16 table variant (halves HBM traffic) needs rows % 16.
    rows = max(8, min(_round_up(n, 8), _round_up(rows_per_tile, 8)))
    # Cap the buffered working set (2 gather + 2 output buffers) to ~24 MiB so
    # it stays comfortably inside v7x's 64 MiB VMEM.
    max_rows_by_vmem = max(8, ((24 << 20) // (4 * d_pad * itemsize)) // 8 * 8)
    rows = min(rows, max_rows_by_vmem)

    ids = x.reshape(n).astype(jnp.int32)

    if table_in_vmem:
        # ---- Fast path: VMEM-resident table, one-hot MXU gather. ------------
        n_tiles = pl.cdiv(n, rows)
        n_pad = n_tiles * rows
        if n_pad != n:
            ids = jnp.pad(ids, (0, n_pad - n))        # token 0 is a valid row
        ids3 = ids.reshape(n_tiles, rows, 1)
        vmem_limit = min(max(2 * n_tokens * d_pad * itemsize
                             + 4 * rows * d_pad * itemsize + (8 << 20),
                             32 << 20), 48 << 20)
        out = pl.pallas_call(
            _onehot_gather_kernel,
            out_shape=jax.ShapeDtypeStruct((n_pad, d_pad), prepared_table.dtype),
            grid=(n_tiles,),
            in_specs=[
                pl.BlockSpec((1, rows, 1), lambda t: (t, 0, 0)),
                pl.BlockSpec((n_tokens, d_pad), lambda t: (0, 0)),  # table stays resident
            ],
            out_specs=pl.BlockSpec((rows, d_pad), lambda t: (t, 0)),
            compiler_params=pltpu.CompilerParams(
                dimension_semantics=("parallel",),
                vmem_limit_bytes=int(vmem_limit)),
        )(ids3, prepared_table)
    else:
        # ---- Large-table path: HBM table + double-buffered row DMAs. --------
        total_tiles = pl.cdiv(n, rows)
        n_outer = 2 if total_tiles >= 2 else 1        # megacore-friendly outer axis
        n_inner = pl.cdiv(total_tiles, n_outer)
        n_pad = n_outer * n_inner * rows
        if n_pad != n:
            ids = jnp.pad(ids, (0, n_pad - n))
        # TODO(synk): chunk the call (or block the ids input) for very long B*S
        # so the scalar-prefetched ids stay within SMEM.
        if n_pad > (1 << 15):
            raise ValueError("B*S too large for whole-sequence SMEM ids; chunk the call.")

        vmem_limit = min(max(4 * rows * d_pad * itemsize + (16 << 20), 32 << 20),
                         48 << 20)
        out = pl.pallas_call(
            functools.partial(_dma_gather_kernel, rows=rows, n_inner=n_inner),
            out_shape=jax.ShapeDtypeStruct((n_pad, d_pad), prepared_table.dtype),
            grid_spec=pltpu.PrefetchScalarGridSpec(
                num_scalar_prefetch=1,
                grid=(n_outer, n_inner),
                in_specs=[pl.BlockSpec(memory_space=pl.ANY)],
                out_specs=pl.BlockSpec(
                    (rows, d_pad), lambda o, i, ids_ref: (o * n_inner + i, 0)),
                scratch_shapes=[
                    pltpu.VMEM((2, rows, d_pad), prepared_table.dtype),
                    pltpu.SemaphoreType.DMA((2,)),
                ],
            ),
            compiler_params=pltpu.CompilerParams(
                dimension_semantics=("parallel", "arbitrary"),
                vmem_limit_bytes=int(vmem_limit)),
        )(ids, prepared_table)

    if n_pad != n or d_pad != d_model:
        out = out[:n, :d_model]
    return out.reshape(b, s, d_model)


def s4_embedding(x, emb_weight, *, rescale=True, **kwargs):
    """Convenience wrapper (prep should normally be hoisted to init time)."""
    return s4_embedding_forward(
        x, prepare_s4_embedding_table(emb_weight, rescale=rescale),
        emb_weight.shape[1], **kwargs)


if __name__ == "__main__":
    key = jax.random.PRNGKey(0)
    k1, k2, k3, k4 = jax.random.split(key, 4)

    # ---- Test 1: module-sized shapes -> VMEM-resident fast path. -----------
    n_tokens, d_model, batch, seq = 64, 32, 2, 8
    # nn.init.normal_(weight, mean=0, std=d_model ** -0.5)
    w = jax.random.normal(k1, (n_tokens, d_model), jnp.float32) * (d_model ** -0.5)
    x = jax.random.randint(k2, (batch, seq), 0, n_tokens, dtype=jnp.int32)
    table = prepare_s4_embedding_table(w, rescale=True)      # once, at "init"
    out = jax.block_until_ready(s4_embedding_forward(x, table, d_model))
    ref = w[x] * (d_model ** 0.5)
    assert out.shape == (batch, seq, d_model)
    assert jnp.allclose(out, ref, atol=1e-5, rtol=1e-5)

    # ---- Test 2: force the HBM DMA-gather (double-buffered) path. ----------
    n_tokens2, d_model2, batch2, seq2 = 512, 128, 2, 96
    w2 = jax.random.normal(k3, (n_tokens2, d_model2), jnp.float32) * (d_model2 ** -0.5)
    x2 = jax.random.randint(k4, (batch2, seq2), 0, n_tokens2, dtype=jnp.int32)
    table2 = prepare_s4_embedding_table(w2, rescale=True)
    out2 = jax.block_until_ready(
        s4_embedding_forward(x2, table2, d_model2,
                             table_in_vmem=False, rows_per_tile=64))
    ref2 = w2[x2] * (d_model2 ** 0.5)
    assert out2.shape == (batch2, seq2, d_model2)
    assert jnp.allclose(out2, ref2, atol=1e-5, rtol=1e-5)

    print("KERNEL_OK")
</pallas_src>

<mosaic_0001>
module attributes {stable_mosaic.version = 11 : i64} {
  func.func @_onehot_gather_kernel(%arg0: i32, %arg1: memref<1x16x1xi32, #tpu.memory_space<vmem>>, %arg2: memref<64x128xf32, #tpu.memory_space<vmem>>, %arg3: memref<16x128xf32, #tpu.memory_space<vmem>>) attributes {dimension_semantics = [#tpu.dimension_semantics<parallel>], iteration_bounds = array<i64: 1>, scalar_prefetch = 0 : i64, scratch_operands = 0 : i64, tpu.core_type = #tpu.core_type<tc>, window_params = [{transform_indices = @transform_0, window_bounds = array<i64: 1, 16, 1>}, {pipeline_mode = #tpu.pipeline_mode<synchronous>, transform_indices = @transform_1, window_bounds = array<i64: 64, 128>}, {transform_indices = @transform_2, window_bounds = array<i64: 16, 128>}]} {
    %c0 = arith.constant 0 : index
    %c0_0 = arith.constant 0 : index
    %c0_1 = arith.constant 0 : index
    %0 = vector.load %arg1[%c0, %c0_0, %c0_1] : memref<1x16x1xi32, #tpu.memory_space<vmem>>, vector<1x16x1xi32>
    %1 = vector.shape_cast %0 : vector<1x16x1xi32> to vector<16x1xi32>
    %2 = tpu.iota {dimensions = array<i32: 1>} : vector<16x64xi32>
    %3 = vector.broadcast %1 : vector<16x1xi32> to vector<16x64xi32>
    %4 = arith.cmpi eq, %3, %2 : vector<16x64xi32>
    %5 = arith.extui %4 : vector<16x64xi1> to vector<16x64xi32>
    %6 = arith.sitofp %5 : vector<16x64xi32> to vector<16x64xf32>
    %c0_2 = arith.constant 0 : index
    %c0_3 = arith.constant 0 : index
    %7 = vector.load %arg2[%c0_2, %c0_3] : memref<64x128xf32, #tpu.memory_space<vmem>>, vector<64x128xf32>
    %cst = arith.constant dense<0.000000e+00> : vector<16x128xf32>
    %8 = tpu.matmul %6, %7, %cst {dimension_numbers = #tpu.dot_dimension_numbers<[1], [0], [0], [1], [0, 0, 1, 1], [], []>} : vector<16x64xf32>, vector<64x128xf32>, vector<16x128xf32> -> vector<16x128xf32>
    %c0_4 = arith.constant 0 : index
    %c0_5 = arith.constant 0 : index
    %9 = vector.load %arg3[%c0_4, %c0_5] : memref<16x128xf32, #tpu.memory_space<vmem>>, vector<16x128xf32>
    tpu.vector_store %arg3[%c0_4, %c0_5], %8 {strides = array<i32>} : memref<16x128xf32, #tpu.memory_space<vmem>>, vector<16x128xf32>,
    return
  }
  func.func @transform_0(%arg0: i32) -> (i32, i32, i32) {
    %c0_i32 = arith.constant 0 : i32
    %c0_i32_0 = arith.constant 0 : i32
    %c0_i32_1 = arith.constant 0 : i32
    return %arg0, %c0_i32, %c0_i32_0 : i32, i32, i32
  }
  func.func @transform_1(%arg0: i32) -> (i32, i32) {
    %c0_i32 = arith.constant 0 : i32
    %c0_i32_0 = arith.constant 0 : i32
    %c0_i32_1 = arith.constant 0 : i32
    return %c0_i32, %c0_i32_0 : i32, i32
  }
  func.func @transform_2(%arg0: i32) -> (i32, i32) {
    %c0_i32 = arith.constant 0 : i32
    %c0_i32_0 = arith.constant 0 : i32
    return %arg0, %c0_i32 : i32, i32
  }
}

</mosaic_0001>

<bundles_post_ra>
// kernel: tpu_custom_call.1
= control target key start
LH: loop header
LB: loop body
LE: loop exit
PB: predicated region body
PF: predicated region fallthrough
CT: control target
= control target key end

     0   :  { %7 = vsyncpa [#allocation3], 0  ;;  %s274_s0 = inlined_call_operand.vmem [shape: s32[1,16,1], index: 0, kind: input, shape index: {}]   ;;  %s275_s1 = inlined_call_operand.hbm [shape: f32[64,128], index: 1, kind: input, shape index: {}]   ;;  %s276_s2 = inlined_call_operand.hbm [shape: f32[16,128], index: 2, kind: output, shape index: {}]  }
   0x1   :  { %8 = vsyncpa [#allocation4], 0  ;;  %s235_s9 = smov [#allocation2]  }
   0x2   :  { %s16_s10 = sshll.u32 %s235_s9, 4  ;;  %s17_s10 = int_to_ptr.vmem [resolvable:$true] %s16_s10 }
   0x3   :  { %s199_s11 = scalar_lea.vmem %s17_s10, 1024  ;;  %p204_p1 = scmp.lt.s32.totalorder %s17_s10, %s17_s10 }
   0x4   :  { %p200_p0 = scmp.ne.s32.totalorder %s17_s10, %s199_s11  ;;  %p205_p2 = scmp.lt.s32.totalorder %s199_s11, %s199_s11 }
   0x6   :  { %p206_p3 = por %p205_p2, %p204_p1 }
   0x8   :  { %p207_p4 = pnand %p206_p3, %p200_p0 }
   0xa   :  { %210 = shalt.err (!%p207_p4)
}
   0xb   :  { %s236_s12 = smov 128   ;;  %s237_s13 = smov 8  }
   0xc   :  { %22 = dma.hbm_to_vmem [thread:$0]  %s275_s1, 1024, %s17_s10, [#allocation3], %s236_s12, %s236_s12, %s237_s13  }
   0xd   :  { %231 = dma.done.wait [#allocation3], 1024  }
   0xe   :  { %232 = vsyncadd [#allocation3], 4294966272  ;;  %v238_v0 = vmov 0   ;;  %v26_v1 = vld [vmem:[%s274_s0] sm:$0xff]  ;;  %v49_v2 = vld [vmem:[#allocation2 + $0x38] sm:$0xff]  ;;  %v28_v11 = vlaneseq  ;;  %vm50_vm0 = vcmask 523264  }
   0xf   :  { %190 = vset.pattern.permute.xlu0 %v238_v0  ;;  %165 = vmatprep.subr.mxu0 %v49_v2  ;;  %v48_v3 = vld [vmem:[#allocation2 + $0x30] sm:$0xff]  ;;  %v27_v4 = vld [vmem:[%s274_s0 + $0x8] sm:$0xff]  ;;  %v46_v6 = vld [vmem:[#allocation2 + $0x20] sm:$0xff]  ;;  %v239_v14 = vmov 0.0   ;;  %s240_s0 = smov [#allocation5]  }
  0x10   :  { %31 = vperm.xlu0 %190, %v26_v1   ;;  %166 = vmatpush3.msra.mxu0 %v49_v2  ;;  %v47_v5 = vld [vmem:[#allocation2 + $0x28] sm:$0xff]  ;;  %v45_v7 = vld [vmem:[#allocation2 + $0x18] sm:$0xff]  ;;  %v44_v8 = vld [vmem:[#allocation2 + $0x10] sm:$0xff]  ;;  %v29_v12 = vand.u32 127, %v28_v11  ;;  %s139_s1 = sshll.u32 %s240_s0, 4  ;;  %s140_s1 = int_to_ptr.vmem [resolvable:$true] %s139_s1 }
  0x11   :  { %167 = vmatprep.subr.mxu0 %v48_v3  ;;  %v43_v9 = vld [vmem:[#allocation2 + $0x8] sm:$0xff]  ;;  %v42_v10 = vld [vmem:[#allocation2] sm:$0xff]  ;;  %s211_s20 = scalar_lea.vmem %s140_s1, 256  ;;  %p216_p6 = scmp.lt.s32.totalorder %s140_s1, %s140_s1 }
  0x12   :  { %168 = vmatpush3.msra.mxu0 %v48_v3  ;;  %p212_p5 = scmp.ne.s32.totalorder %s140_s1, %s211_s20  ;;  %p217_p7 = scmp.lt.s32.totalorder %s211_s20, %s211_s20 }
  0x13   :  { %169 = vmatprep.subr.mxu0 %v47_v5 }
  0x14   :  { %34 = vperm.xlu0 %190, %v27_v4   ;;  %170 = vmatpush3.msra.mxu0 %v47_v5  ;;  %p218_p8 = por %p217_p7, %p216_p6 }
  0x15   :  { %171 = vmatprep.subr.mxu0 %v46_v6 }
  0x16   :  { %172 = vmatpush3.msra.mxu0 %v46_v6  ;;  %p219_p9 = pnand %p218_p8, %p212_p5 }
  0x17   :  { %173 = vmatprep.subr.mxu0 %v45_v7 }
  0x18   :  { %174 = vmatpush3.msra.mxu0 %v45_v7 }
  0x19   :  { %175 = vmatprep.subr.mxu0 %v44_v8 }
  0x1a   :  { %176 = vmatpush3.msra.mxu0 %v44_v8 }
  0x1b   :  { %177 = vmatprep.subr.mxu0 %v43_v9 }
  0x1c   :  { %178 = vmatpush3.msra.mxu0 %v43_v9 }
  0x1d   :  { %179 = vmatprep.subr.mxu0 %v42_v10 }
  0x1e   :  { %180 = vmatpush3.msra.mxu0 %v42_v10 }
  0x8b   :  { %v32_v13 = vpop.permute.xlu0 %31 }
  0x8c   :  { %vm36_vm1 = vcmp.eq.s32.totalorder %v32_v13, %v29_v12 }
  0x8d   :  { %v151_v15 = vsel %vm36_vm1, 1.0, %v239_v14 }
  0x8e   :  { %181 = vmatprep.mubr.msk.f32.mxu0 %vm50_vm0, %v151_v15 }
  0x8f   :  { %v35_v16 = vpop.permute.xlu0 %34 }
  0x90   :  { %vm37_vm2 = vcmp.eq.s32.totalorder %v35_v16, %v29_v12 }
  0x91   :  { %v152_v17 = vsel %vm37_vm2, 1.0, %v239_v14 }
  0x92   :  { %182 = vmatmul.mubr.msk.f32.vlgmr.msra.gmra.mxu0 %vm50_vm0, %v152_v17 }
 0x152   :  { %v183_v18 = vpop.f32.mrf.mxu0 }
 0x153   :  { %133 = vst [vmem:[#allocation5 + $0x8] sm:$0xff] %v183_v18 }
 0x154   :  { %v123_v19 = vpop.f32.mrf.mxu0 }
 0x155   :  { %132 = vst [vmem:[#allocation5] sm:$0xff] %v123_v19 }
 0x156   :  { %222 = shalt.err (!%p219_p9)
}
 0x157   :  { %145 = dma.vmem_to_hbm [thread:$0]  %s140_s1, 256, %s276_s2, [#allocation4], %s236_s12, %s236_s12, %s237_s13  }
 0x158   :  { %233 = dma.done.wait [#allocation4], 256  }
 0x159   :  { %234 = vsyncadd [#allocation4], 4294967040 }
 0x15a   :  { %149 = vsyncpa [#allocation3], 1 }
 0x15b   :  { %150 = vsyncpa [#allocation4], 1 }

</bundles_post_ra>
